<compile_context>
chip_gen: v7x
topology: tpu7x:2x2x1
jax: 0.10.0
libtpu: 0.0.40
codegen_flags: <defaults>
</compile_context>

<pallas_src>
import jax
import jax.numpy as jnp
from jax.experimental import pallas as pl
from jax.experimental.pallas import tpu as pltpu


def _round_up(a: int, b: int) -> int:
    return (a + b - 1) // b * b


def _sublane(dtype) -> int:
    # Second-to-last block dim must be a multiple of the sublane count for the dtype.
    return {4: 8, 2: 16, 1: 32}.get(jnp.dtype(dtype).itemsize, 8)


# --------------------------------------------------------------------------------------
# Fused kernel: one row-tile of buttons -> embeddings.
#   x_ref : [tm, n_buttons]   (the x*2-1 remap is already folded into w1/b1)
#   w1_ref: [n_buttons, hidden]   bf16, whole array resident in VMEM
#   b1_ref: [1, hidden]           f32
#   w2_ref: [hidden, dim_out]     bf16, whole array resident in VMEM
#   b2_ref: [1, dim_out]          f32
#   o_ref : [tm, dim_out]
# --------------------------------------------------------------------------------------
def _button_mlp_kernel(x_ref, w1_ref, b1_ref, w2_ref, b2_ref, o_ref):
    x = x_ref[...].astype(w1_ref.dtype)                       # one cheap cast per block
    # fc1 (MXU, bf16 operands, f32 accumulate) + bias
    h = jnp.dot(x, w1_ref[...], preferred_element_type=jnp.float32) + b1_ref[...]
    # SiLU: sigmoid goes to the EUP slot, mul to the VPU (hidden under the matmuls)
    h = h * jax.nn.sigmoid(h)
    # fc2 (MXU) + bias
    out = jnp.dot(h.astype(w2_ref.dtype), w2_ref[...],
                  preferred_element_type=jnp.float32) + b2_ref[...]
    o_ref[...] = out.astype(o_ref.dtype)


# --------------------------------------------------------------------------------------
# Wrapper: flatten leading dims, fold the affine into fc1, tile rows over a 1-D grid.
# --------------------------------------------------------------------------------------
def button_embedding(x, w1, b1, w2, b2, *, block_rows=2048,
                     compute_dtype=jnp.bfloat16, out_dtype=None,
                     vmem_limit_bytes=48 * 1024 * 1024):
    """x: [..., n_buttons]; w1: [n_buttons, hidden]; w2: [hidden, dim_out]."""
    *lead, n_buttons = x.shape
    hidden = w1.shape[1]
    dim_out = w2.shape[1]
    assert w1.shape == (n_buttons, hidden)
    assert b1.shape == (hidden,)
    assert w2.shape == (hidden, dim_out)
    assert b2.shape == (dim_out,)

    out_dtype = x.dtype if out_dtype is None else jnp.dtype(out_dtype)

    # ---- Fold x*2 - 1 into fc1 (exact algebra: (2x-1)@w1 + b1 = x@(2w1) + b1 - sum(w1)) -
    w1f = w1.astype(jnp.float32)
    w1_eff = (2.0 * w1f).astype(compute_dtype)
    b1_eff = (b1.astype(jnp.float32) - jnp.sum(w1f, axis=0)).reshape(1, hidden)
    w2_eff = w2.astype(compute_dtype)
    b2_eff = b2.astype(jnp.float32).reshape(1, dim_out)

    x2 = x.reshape(-1, n_buttons)
    n = x2.shape[0]

    # ---- Row-tile selection ------------------------------------------------------------
    sub = max(_sublane(x2.dtype), _sublane(out_dtype))
    tm = _round_up(min(block_rows, _round_up(n, sub)), sub)

    # Keep the per-step working set inside a conservative VMEM budget (fits the default
    # scoped limit headroom on v5e/v6e/v7x once vmem_limit_bytes is raised below).
    def _vmem_est(t):
        return (2 * t * n_buttons * x2.dtype.itemsize          # x blocks (double-buffered)
                + 2 * t * dim_out * out_dtype.itemsize          # out blocks (double-buffered)
                + 2 * t * hidden * 4                            # f32 h + SiLU temporaries
                + w1_eff.size * w1_eff.dtype.itemsize           # resident weights (1 copy)
                + w2_eff.size * w2_eff.dtype.itemsize
                + (hidden + dim_out) * 4)                       # biases
    budget = int(0.7 * vmem_limit_bytes)
    while tm > sub and _vmem_est(tm) > budget:
        tm = max(sub, _round_up(tm // 2, sub))

    # Guarantee >= 2 grid steps when possible so ("parallel",) splits rows across the
    # two TensorCores on megacore parts (v7x); harmless on single-core chips.
    if pl.cdiv(n, tm) < 2 and n > sub:
        tm = _round_up(pl.cdiv(n, 2), sub)

    grid = (pl.cdiv(n, tm),)

    out = pl.pallas_call(
        _button_mlp_kernel,
        out_shape=jax.ShapeDtypeStruct((n, dim_out), out_dtype),
        grid=grid,
        in_specs=[
            pl.BlockSpec((tm, n_buttons), lambda i: (i, 0)),       # x row tiles (pipelined)
            # Tiny weights/biases: whole-array, single-buffered VMEM residents
            # (copied in once; no per-step DMA, no double buffering).
            pl.BlockSpec(memory_space=pltpu.MemorySpace.VMEM),     # w1
            pl.BlockSpec(memory_space=pltpu.MemorySpace.VMEM),     # b1
            pl.BlockSpec(memory_space=pltpu.MemorySpace.VMEM),     # w2
            pl.BlockSpec(memory_space=pltpu.MemorySpace.VMEM),     # b2
        ],
        out_specs=pl.BlockSpec((tm, dim_out), lambda i: (i, 0)),   # lane-dense stores
        compiler_params=pltpu.CompilerParams(
            dimension_semantics=("parallel",),                     # rows are independent
            vmem_limit_bytes=vmem_limit_bytes,
        ),
    )(x2, w1_eff, b1_eff, w2_eff, b2_eff)

    return out.reshape(*lead, dim_out)


# --------------------------------------------------------------------------------------
# Pure-JAX reference (mirrors the PyTorch forward, f32).
# --------------------------------------------------------------------------------------
def button_embedding_ref(x, w1, b1, w2, b2):
    xf = x.astype(jnp.float32) * 2.0 - 1.0
    h = xf @ w1.astype(jnp.float32) + b1.astype(jnp.float32)
    h = h * jax.nn.sigmoid(h)
    out = h @ w2.astype(jnp.float32) + b2.astype(jnp.float32)
    return out.astype(x.dtype)


if __name__ == "__main__":
    # Small config consistent with the module: dim=128 (module default 512),
    # hidden = 4*dim, n_buttons binary inputs, batch of 2 with 8 timesteps.
    n_buttons = 8
    dim = 128
    hidden = dim * 4          # 512
    dim_out = 256
    B, T = 2, 8

    key = jax.random.PRNGKey(0)
    kx, kw1, kb1, kw2, kb2 = jax.random.split(key, 5)
    x = jax.random.bernoulli(kx, 0.5, (B, T, n_buttons)).astype(jnp.float32)
    w1 = jax.random.normal(kw1, (n_buttons, hidden), jnp.float32) / jnp.sqrt(n_buttons)
    b1 = jax.random.normal(kb1, (hidden,), jnp.float32) * 0.02
    w2 = jax.random.normal(kw2, (hidden, dim_out), jnp.float32) / jnp.sqrt(hidden)
    b2 = jax.random.normal(kb2, (dim_out,), jnp.float32) * 0.02

    out = button_embedding(x, w1, b1, w2, b2)
    jax.block_until_ready(out)
    assert out.shape == (B, T, dim_out), f"bad output shape {out.shape}"

    ref = button_embedding_ref(x, w1, b1, w2, b2)
    err = float(jnp.max(jnp.abs(out.astype(jnp.float32) - ref.astype(jnp.float32))))
    # bf16 MXU operands (f32 accumulate) => loosened tolerance vs. the exact f32 reference.
    assert err < 5e-2, f"mismatch vs reference: max abs err {err}"

    # Also exercise a row count that does NOT divide the row tile (partial last block).
    x_odd = jax.random.bernoulli(kx, 0.5, (3, 5, n_buttons)).astype(jnp.float32)
    out_odd = button_embedding(x_odd, w1, b1, w2, b2)
    jax.block_until_ready(out_odd)
    ref_odd = button_embedding_ref(x_odd, w1, b1, w2, b2)
    assert out_odd.shape == (3, 5, dim_out), f"bad output shape {out_odd.shape}"
    err_odd = float(jnp.max(jnp.abs(out_odd.astype(jnp.float32) - ref_odd.astype(jnp.float32))))
    assert err_odd < 5e-2, f"mismatch vs reference (partial block): max abs err {err_odd}"

    print("KERNEL_OK")
</pallas_src>

<mosaic_0001>
module attributes {stable_mosaic.version = 11 : i64} {
  func.func @_button_mlp_kernel(%arg0: i32, %arg1: memref<8x8xf32, #tpu.memory_space<vmem>>, %arg2: memref<8x512xbf16, #tpu.memory_space<vmem>>, %arg3: memref<1x512xf32, #tpu.memory_space<vmem>>, %arg4: memref<512x256xbf16, #tpu.memory_space<vmem>>, %arg5: memref<1x256xf32, #tpu.memory_space<vmem>>, %arg6: memref<8x256xf32, #tpu.memory_space<vmem>>) attributes {dimension_semantics = [#tpu.dimension_semantics<parallel>], iteration_bounds = array<i64: 2>, scalar_prefetch = 0 : i64, scratch_operands = 0 : i64, tpu.core_type = #tpu.core_type<tc>, window_params = [{transform_indices = @transform_0, window_bounds = array<i64: 8, 8>}, {pipeline_mode = #tpu.pipeline_mode<synchronous>, transform_indices = @transform_1, window_bounds = array<i64: 8, 512>}, {pipeline_mode = #tpu.pipeline_mode<synchronous>, transform_indices = @transform_2, window_bounds = array<i64: 1, 512>}, {pipeline_mode = #tpu.pipeline_mode<synchronous>, transform_indices = @transform_3, window_bounds = array<i64: 512, 256>}, {pipeline_mode = #tpu.pipeline_mode<synchronous>, transform_indices = @transform_4, window_bounds = array<i64: 1, 256>}, {transform_indices = @transform_5, window_bounds = array<i64: 8, 256>}]} {
    %c0 = arith.constant 0 : index
    %c0_0 = arith.constant 0 : index
    %0 = vector.load %arg1[%c0, %c0_0] : memref<8x8xf32, #tpu.memory_space<vmem>>, vector<8x8xf32>
    %1 = arith.truncf %0 : vector<8x8xf32> to vector<8x8xbf16>
    %c0_1 = arith.constant 0 : index
    %c0_2 = arith.constant 0 : index
    %2 = vector.load %arg2[%c0_1, %c0_2] : memref<8x512xbf16, #tpu.memory_space<vmem>>, vector<8x512xbf16>
    %cst = arith.constant dense<0.000000e+00> : vector<8x512xf32>
    %3 = tpu.matmul %1, %2, %cst {dimension_numbers = #tpu.dot_dimension_numbers<[1], [0], [0], [1], [0, 0, 1, 1], [], []>} : vector<8x8xbf16>, vector<8x512xbf16>, vector<8x512xf32> -> vector<8x512xf32>
    %c0_3 = arith.constant 0 : index
    %c0_4 = arith.constant 0 : index
    %4 = vector.load %arg3[%c0_3, %c0_4] : memref<1x512xf32, #tpu.memory_space<vmem>>, vector<1x512xf32>
    %5 = vector.broadcast %4 : vector<1x512xf32> to vector<8x512xf32>
    %6 = arith.addf %3, %5 : vector<8x512xf32>
    %7 = arith.negf %6 : vector<8x512xf32>
    %8 = math.exp %7 : vector<8x512xf32>
    %cst_5 = arith.constant 1.000000e+00 : f32
    %9 = vector.broadcast %cst_5 : f32 to vector<8x512xf32>
    %10 = arith.addf %9, %8 : vector<8x512xf32>
    %11 = arith.divf %9, %10 : vector<8x512xf32>
    %12 = arith.mulf %6, %11 : vector<8x512xf32>
    %13 = arith.truncf %12 : vector<8x512xf32> to vector<8x512xbf16>
    %c0_6 = arith.constant 0 : index
    %c0_7 = arith.constant 0 : index
    %14 = vector.load %arg4[%c0_6, %c0_7] : memref<512x256xbf16, #tpu.memory_space<vmem>>, vector<512x256xbf16>
    %cst_8 = arith.constant dense<0.000000e+00> : vector<8x256xf32>
    %15 = tpu.matmul %13, %14, %cst_8 {dimension_numbers = #tpu.dot_dimension_numbers<[1], [0], [0], [1], [0, 0, 1, 1], [], []>} : vector<8x512xbf16>, vector<512x256xbf16>, vector<8x256xf32> -> vector<8x256xf32>
    %c0_9 = arith.constant 0 : index
    %c0_10 = arith.constant 0 : index
    %16 = vector.load %arg5[%c0_9, %c0_10] : memref<1x256xf32, #tpu.memory_space<vmem>>, vector<1x256xf32>
    %17 = vector.broadcast %16 : vector<1x256xf32> to vector<8x256xf32>
    %18 = arith.addf %15, %17 : vector<8x256xf32>
    %c0_11 = arith.constant 0 : index
    %c0_12 = arith.constant 0 : index
    %19 = vector.load %arg6[%c0_11, %c0_12] : memref<8x256xf32, #tpu.memory_space<vmem>>, vector<8x256xf32>
    tpu.vector_store %arg6[%c0_11, %c0_12], %18 {strides = array<i32>} : memref<8x256xf32, #tpu.memory_space<vmem>>, vector<8x256xf32>,
    return
  }
  func.func @transform_0(%arg0: i32) -> (i32, i32) {
    %c0_i32 = arith.constant 0 : i32
    %c0_i32_0 = arith.constant 0 : i32
    return %arg0, %c0_i32 : i32, i32
  }
  func.func @transform_1(%arg0: i32) -> (i32, i32) {
    %c0_i32 = arith.constant 0 : i32
    %c0_i32_0 = arith.constant 0 : i32
    %c0_i32_1 = arith.constant 0 : i32
    return %c0_i32, %c0_i32_0 : i32, i32
  }
  func.func @transform_2(%arg0: i32) -> (i32, i32) {
    %c0_i32 = arith.constant 0 : i32
    %c0_i32_0 = arith.constant 0 : i32
    %c0_i32_1 = arith.constant 0 : i32
    return %c0_i32, %c0_i32_0 : i32, i32
  }
  func.func @transform_3(%arg0: i32) -> (i32, i32) {
    %c0_i32 = arith.constant 0 : i32
    %c0_i32_0 = arith.constant 0 : i32
    %c0_i32_1 = arith.constant 0 : i32
    return %c0_i32, %c0_i32_0 : i32, i32
  }
  func.func @transform_4(%arg0: i32) -> (i32, i32) {
    %c0_i32 = arith.constant 0 : i32
    %c0_i32_0 = arith.constant 0 : i32
    %c0_i32_1 = arith.constant 0 : i32
    return %c0_i32, %c0_i32_0 : i32, i32
  }
  func.func @transform_5(%arg0: i32) -> (i32, i32) {
    %c0_i32 = arith.constant 0 : i32
    %c0_i32_0 = arith.constant 0 : i32
    return %arg0, %c0_i32 : i32, i32
  }
}

</mosaic_0001>

<bundles_post_ra>
// kernel: tpu_custom_call.1
= control target key start
LH: loop header
LB: loop body
LE: loop exit
PB: predicated region body
PF: predicated region fallthrough
CT: control target
= control target key end

     0   :  { %10 = vsyncpa [#allocation3], 0  ;;  %s1516_s0 = inlined_call_operand.vmem [shape: f32[16,8], index: 0, kind: input, shape index: {}]   ;;  %s1517_s1 = inlined_call_operand.vmem [shape: bf16[8,512], index: 1, kind: input, shape index: {}]   ;;  %s1518_s2 = inlined_call_operand.vmem [shape: f32[1,512], index: 2, kind: input, shape index: {}]   ;;  %s1519_s3 = inlined_call_operand.hbm [shape: bf16[512,256], index: 3, kind: input, shape index: {}]   ;;  %s1520_s4 = inlined_call_operand.vmem [shape: f32[1,256], index: 4, kind: input, shape index: {}]   ;;  %s1521_s5 = inlined_call_operand.hbm [shape: f32[16,256], index: 5, kind: output, shape index: {}]  }
   0x1   :  { %11 = vsyncpa [#allocation4], 0 }
   0x2   :  { %13 = vsyncpa [#allocation4 + $0x1], 0  ;;  %s1363_s18 = smov 0   ;;  %s1365_s19 = smov 0  }
   0x3   :  { %s1367_s20 = smov 0   ;;  %s1369_s21 = smov 0  }
   0x4 LB: > { %s1384_s22 = sadd.s32 4294967295, %s1326_s21   ;;  %s969_s23 = sadd.s32 4294967294, %s1326_s21   ;;  %s1326_s21 = sphi %s1369_s21, %s1537_s21   ;;  %s1322_s20 = sphi %s1367_s20, %s1536_s20   ;;  %s1318_s19 = sphi %s1365_s19, %s1535_s19   ;;  %s1314_s18 = sphi %s1363_s18, %s1534_s18  }
   0x5   : > { %s1388_s24 = sadd.s32 1, %s1326_s21   ;;  %s136_s25 = sadd.s32 1, %s1322_s20 }
   0x6   : > { %s133_s26 = ssub.s32 %s1326_s21, %s1388_s24  ;;  %p146_p0 = scmp.ne.s32.totalorder %s1322_s20, %s1318_s19 }
   0x7   : > { %p134_p1 = scmp.eq.s32.totalorder %s133_s26, 0  ;;  %p147_p2 = scmp.eq.s32.totalorder %s1384_s22, 1 }
   0x8   : > { %p152_p3 = scmp.ne.s32.totalorder %s1318_s19, %s1314_s18  ;;  %p153_p4 = scmp.eq.s32.totalorder %s969_s23, 1 }
   0x9   : > { %s1399_s27 = scalar_select %p134_p1, %s1322_s20, %s136_s25  }
   0xa   : > { %p1401_p5 = por %p147_p2, %p146_p0  ;;  %p1405_p6 = por %p153_p4, %p152_p3 }
   0xb   : > { %p970_p7 = scmp.ge.s32.totalorder %s1326_s21, 1  ;;  %p160_p8 = scmp.lt.s32.totalorder %s1326_s21, 3 }
   0xc   : > { %s1525_s28 = scalar_select %p1401_p5, 1, 0 }
   0xd   : > { %s1526_s29 = scalar_select %p1405_p6, 1, 0 }
   0xe   : > { %p1522_p9 = scmp.eq.s32.totalorder %s1384_s22, 0  ;;  %p1412_p10 = pnand %p970_p7, %p160_p8 }
   0xf   : > { %s1328_s6 = smov [#allocation2]   ;;  %s1232_s11 = scalar_lea.hbm %s1519_s3, 8192 }
  0x10   : > { %s1527_s30 = scalar_select %p1412_p10, 1, 0 }
  0x11   : > { %s178_s7 = sshll.u32 %s1328_s6, 4  ;;  %p1069_p11 = pneg %p1412_p10  ;;  %s179_s7 = int_to_ptr.vmem [resolvable:$true] %s178_s7 }
  0x12   : > { %p1233_p13 = scmp.ne.s32.totalorder %s1519_s3, %s1232_s11  ;;  %p1239_p3 = scmp.lt.u32.totalorder %s1232_s11, %s1519_s3 }
  0x13   : > { %p1420_p12 = pnand %p1522_p9, %p1069_p11 }
  0x15   : > { %p1234_p0 = pneg %p1420_p12 }
  0x17   : > { %p1235_p1 = pnand %p1234_p0, %p1233_p13 }
  0x19   : > { %p1236_p2 = pneg %p1235_p1 }
  0x1b   : > { %p1241_p4 = pnand %p1239_p3, %p1236_p2 }
  0x1d   : > { %1244 = shalt.err (!%p1241_p4)
}
  0x1e   : > { %s1245_s16 = scalar_lea.vmem %s179_s7, 8192  ;;  %p1253_p9 = scmp.lt.s32.totalorder %s179_s7, %s179_s7 }
  0x1f   : > { %p1246_p7 = scmp.ne.s32.totalorder %s179_s7, %s1245_s16  ;;  %p1254_p6 = scmp.lt.s32.totalorder %s1245_s16, %s1245_s16 }
  0x21   : > { %p1248_p8 = pnand %p1246_p7, %p1234_p0  ;;  %p1255_p5 = por %p1254_p6, %p1253_p9 }
  0x23   : > { %p1249_p11 = pneg %p1248_p8 }
  0x25   : > { %p1256_p10 = pnand %p1255_p5, %p1249_p11 }
  0x27   : > { %1259 = shalt.err (!%p1256_p10)
}
  0x28   : > { %s1329_s17 = smov 128   ;;  %s1330_s23 = smov 8  }
  0x29   : > { %1072 = dma.hbm_to_vmem [thread:$0]  (!%p1420_p12), %s1519_s3, 8192, %s179_s7, [#allocation3], %s1329_s17, %s1329_s17, %s1330_s23  }
  0x2a   : > { %p1529_p13 = scmp.ne.s32.totalorder %s1527_s30, 0 }
  0x2b   : > { %p1530_p1 = scmp.eq.s32.totalorder (!%p1529_p13), %s1384_s22, 0 }
  0x2c   : > { %204 = sbr.rel (%p1529_p13) target bundleno = 539 (0x21b), region = 40 }
  0x33   : > { %1305 = dma.done.wait (%p1530_p1), [#allocation3], 8192   ;;  %p1531_p0 = pmov %p1530_p1 }
  0x34   : > { %p231_p5 = scmp.lt.s32.totalorder %s1384_s22, 1  ;;  %v1331_v0 = vmov 0   ;;  %v238_v1 = vld [vmem:[%s1517_s1] sm:$0xff]  ;;  %vm276_vm0 = vcmask 1043456   ;;  %v239_v2 = vld [vmem:[%s1517_s1 + $0x8] sm:$0xff]  ;;  %vm272_vm1 = vcmask 64512  }
  0x35   : > { %1307 = vsyncadd (%p1531_p0), [#allocation3], 4294959104  ;;  %321 = vmatprep.mubr.bf16.mxu0 %v1331_v0  ;;  %362 = vmatprep.mubr.bf16.mxu1 %v1331_v0  ;;  %v978_v4 = vcombine.high %v238_v1, %v238_v1  ;;  %v980_v5 = vcombine.high %v239_v2, %v239_v2  ;;  %v977_v6 = vcombine.low %v238_v1, %v238_v1  ;;  %v1122_v8 = vld [vmem:[#allocation2 + $0x4] ss:$8 sps:$4 sm:$0xff]   ;;  %v1120_v12 = vld [vmem:[#allocation2] ss:$8 sps:$4 sm:$0xff]  }
  0x36   : > { %s232_s6 = scalar_select %p231_p5, %s1384_s22, 1  ;;  %v979_v7 = vcombine.low %v239_v2, %v239_v2  ;;  %v1125_v13 = vld [vmem:[#allocation2 + $0x104] ss:$8 sps:$4 sm:$0xff]   ;;  %v1123_v14 = vld [vmem:[#allocation2 + $0x100] ss:$8 sps:$4 sm:$0xff]  }
  0x37   : > { %981 = vmatprep.subr.msk.bf16.mxu0 %vm276_vm0, %v978_v4  ;;  %983 = vmatprep.subr.msk.bf16.mxu1 %vm276_vm0, %v980_v5  ;;  %v278_v9 = vsel %vm276_vm0, %v977_v6, 0  ;;  %v1128_v15 = vld [vmem:[#allocation2 + $0x14] ss:$8 sps:$4 sm:$0xff]   ;;  %v1126_v17 = vld [vmem:[#allocation2 + $0x10] ss:$8 sps:$4 sm:$0xff]   ;;  %s228_s16 = sand.u32 1, %s1318_s19  }
  0x38   : > { %s976_s8 = sshll.u32 %s232_s6, 3  ;;  %v284_v10 = vsel %vm276_vm0, %v979_v7, 0  ;;  %290 = vmatpush1.bf16.msra.mxu0 %v278_v9  ;;  %v1131_v16 = vld [vmem:[#allocation2 + $0x114] ss:$8 sps:$4 sm:$0xff]   ;;  %v1129_v18 = vld [vmem:[#allocation2 + $0x110] ss:$8 sps:$4 sm:$0xff]  }
  0x39   : > { %s234_s7 = scalar_lea.vmem %s1516_s0, %s976_s8  ;;  %331 = vmatpush1.bf16.msra.mxu1 %v284_v10  ;;  %840 = vmatprep.subr.bf16.mxu0 %v1125_v13  ;;  %v1134_v19 = vld [vmem:[#allocation2 + $0x24] ss:$8 sps:$4 sm:$0xff]   ;;  %v1132_v21 = vld [vmem:[#allocation2 + $0x20] ss:$8 sps:$4 sm:$0xff]   ;;  %v1140_v23 = vld [vmem:[#allocation2 + $0x34] ss:$8 sps:$4 sm:$0xff]  }
  0x3a   : > { %v236_v3 = vld [vmem:[%s234_s7] sm:$0xff]  ;;  %799 = vmatprep.subr.bf16.mxu1 %v1122_v8  ;;  %v1137_v20 = vld [vmem:[#allocation2 + $0x124] ss:$8 sps:$4 sm:$0xff]   ;;  %v1135_v22 = vld [vmem:[#allocation2 + $0x120] ss:$8 sps:$4 sm:$0xff]   ;;  %s975_s25 = sshll.u32 %s228_s16, 4 }
  0x3b   : > { %v237_v11 = vpack.c.bf16 %v236_v3, %v236_v3  ;;  %v1143_v24 = vld [vmem:[#allocation2 + $0x134] ss:$8 sps:$4 sm:$0xff]   ;;  %v1138_v25 = vld [vmem:[#allocation2 + $0x30] ss:$8 sps:$4 sm:$0xff]   ;;  %v1146_v27 = vld [vmem:[#allocation2 + $0x44] ss:$8 sps:$4 sm:$0xff]  }
  0x3c   : > { %v1141_v26 = vld [vmem:[#allocation2 + $0x130] ss:$8 sps:$4 sm:$0xff]   ;;  %v1149_v28 = vld [vmem:[#allocation2 + $0x144] ss:$8 sps:$4 sm:$0xff]   ;;  %v1144_v29 = vld [vmem:[#allocation2 + $0x40] ss:$8 sps:$4 sm:$0xff]  }
  0x3d   : > { %982 = vmatmul.mubr.msk.bf16.vlgmr.msra.gmra.mrb[0].mxu0 %vm272_vm1, %v237_v11  ;;  %984 = vmatmul.mubr.msk.bf16.vlgmr.msra.gmra.mrb[0].mxu1 %vm272_vm1, %v237_v11  ;;  %v1147_v30 = vld [vmem:[#allocation2 + $0x140] ss:$8 sps:$4 sm:$0xff]   ;;  %v1152_v31 = vld [vmem:[#allocation2 + $0x54] ss:$8 sps:$4 sm:$0xff]   ;;  %v1150_v33 = vld [vmem:[#allocation2 + $0x50] ss:$8 sps:$4 sm:$0xff]   ;;  %v242_v11 = vlaneseq }
  0x3e   : > { %800 = vmatpush1.bf16.msra.mxu1 %v1120_v12  ;;  %841 = vmatpush1.bf16.msra.mxu0 %v1123_v14  ;;  %v1155_v32 = vld [vmem:[#allocation2 + $0x154] ss:$8 sps:$4 sm:$0xff]   ;;  %v1153_v34 = vld [vmem:[#allocation2 + $0x150] ss:$8 sps:$4 sm:$0xff]   ;;  %v1158_v35 = vld [vmem:[#allocation2 + $0x64] ss:$8 sps:$4 sm:$0xff]  }
  0x3f   : > { %801 = vmatprep.subr.bf16.mxu1 %v1128_v15  ;;  %842 = vmatprep.subr.bf16.mxu0 %v1131_v16  ;;  %v1161_v36 = vld [vmem:[#allocation2 + $0x164] ss:$8 sps:$4 sm:$0xff]   ;;  %v1156_v37 = vld [vmem:[#allocation2 + $0x60] ss:$8 sps:$4 sm:$0xff]   ;;  %v1164_v39 = vld [vmem:[#allocation2 + $0x74] ss:$8 sps:$4 sm:$0xff]  }
  0x40   : > { %v1159_v38 = vld [vmem:[#allocation2 + $0x160] ss:$8 sps:$4 sm:$0xff]   ;;  %v1167_v40 = vld [vmem:[#allocation2 + $0x174] ss:$8 sps:$4 sm:$0xff]   ;;  %v1162_v41 = vld [vmem:[#allocation2 + $0x70] ss:$8 sps:$4 sm:$0xff]  }
  0x41   : > { %v1165_v42 = vld [vmem:[#allocation2 + $0x170] ss:$8 sps:$4 sm:$0xff]   ;;  %v1170_v43 = vld [vmem:[#allocation2 + $0x84] ss:$8 sps:$4 sm:$0xff]   ;;  %v1168_v45 = vld [vmem:[#allocation2 + $0x80] ss:$8 sps:$4 sm:$0xff]  }
  0x42   : > { %802 = vmatpush1.bf16.msra.mxu1 %v1126_v17  ;;  %843 = vmatpush1.bf16.msra.mxu0 %v1129_v18  ;;  %v1173_v44 = vld [vmem:[#allocation2 + $0x184] ss:$8 sps:$4 sm:$0xff]   ;;  %v1171_v46 = vld [vmem:[#allocation2 + $0x180] ss:$8 sps:$4 sm:$0xff]   ;;  %v1176_v47 = vld [vmem:[#allocation2 + $0x94] ss:$8 sps:$4 sm:$0xff]  }
  0x43   : > { %803 = vmatprep.subr.bf16.mxu1 %v1134_v19  ;;  %844 = vmatprep.subr.bf16.mxu0 %v1137_v20  ;;  %v1179_v48 = vld [vmem:[#allocation2 + $0x194] ss:$8 sps:$4 sm:$0xff]   ;;  %v1174_v49 = vld [vmem:[#allocation2 + $0x90] ss:$8 sps:$4 sm:$0xff]   ;;  %v1182_v51 = vld [vmem:[#allocation2 + $0xa4] ss:$8 sps:$4 sm:$0xff]  }
  0x44   : > { %v1177_v50 = vld [vmem:[#allocation2 + $0x190] ss:$8 sps:$4 sm:$0xff]   ;;  %v1185_v52 = vld [vmem:[#allocation2 + $0x1a4] ss:$8 sps:$4 sm:$0xff]   ;;  %v1180_v53 = vld [vmem:[#allocation2 + $0xa0] ss:$8 sps:$4 sm:$0xff]  }
  0x45   : > { %v1183_v54 = vld [vmem:[#allocation2 + $0x1a0] ss:$8 sps:$4 sm:$0xff]   ;;  %v1188_v55 = vld [vmem:[#allocation2 + $0xb4] ss:$8 sps:$4 sm:$0xff]   ;;  %v1186_v57 = vld [vmem:[#allocation2 + $0xb0] ss:$8 sps:$4 sm:$0xff]  }
  0x46   : > { %804 = vmatpush1.bf16.msra.mxu1 %v1132_v21  ;;  %845 = vmatpush1.bf16.msra.mxu0 %v1135_v22  ;;  %v1191_v56 = vld [vmem:[#allocation2 + $0x1b4] ss:$8 sps:$4 sm:$0xff]   ;;  %v1189_v58 = vld [vmem:[#allocation2 + $0x1b0] ss:$8 sps:$4 sm:$0xff]   ;;  %v1194_v59 = vld [vmem:[#allocation2 + $0xc4] ss:$8 sps:$4 sm:$0xff]  }
  0x47   : > { %805 = vmatprep.subr.bf16.mxu1 %v1140_v23  ;;  %846 = vmatprep.subr.bf16.mxu0 %v1143_v24  ;;  %v1197_v60 = vld [vmem:[#allocation2 + $0x1c4] ss:$8 sps:$4 sm:$0xff]   ;;  %v1192_v61 = vld [vmem:[#allocation2 + $0xc0] ss:$8 sps:$4 sm:$0xff]   ;;  %v1200_v63 = vld [vmem:[#allocation2 + $0xd4] ss:$8 sps:$4 sm:$0xff]  }
  0x48   : > { %v1195_v62 = vld [vmem:[#allocation2 + $0x1c0] ss:$8 sps:$4 sm:$0xff]   ;;  %v1203_v0 = vld [vmem:[#allocation2 + $0x1d4] ss:$8 sps:$4 sm:$0xff]   ;;  %v1198_v1 = vld [vmem:[#allocation2 + $0xd0] ss:$8 sps:$4 sm:$0xff]  }
  0x49   : > { %v1201_v2 = vld [vmem:[#allocation2 + $0x1d0] ss:$8 sps:$4 sm:$0xff]   ;;  %v1206_v3 = vld [vmem:[#allocation2 + $0xe4] ss:$8 sps:$4 sm:$0xff]   ;;  %v1204_v5 = vld [vmem:[#allocation2 + $0xe0] ss:$8 sps:$4 sm:$0xff]  }
  0x4a   : > { %806 = vmatpush1.bf16.msra.mxu1 %v1138_v25  ;;  %847 = vmatpush1.bf16.msra.mxu0 %v1141_v26  ;;  %v1209_v4 = vld [vmem:[#allocation2 + $0x1e4] ss:$8 sps:$4 sm:$0xff]   ;;  %v1207_v6 = vld [vmem:[#allocation2 + $0x1e0] ss:$8 sps:$4 sm:$0xff]   ;;  %v1212_v7 = vld [vmem:[#allocation2 + $0xf4] ss:$8 sps:$4 sm:$0xff]  }
  0x4b   : > { %807 = vmatprep.subr.bf16.mxu1 %v1146_v27  ;;  %848 = vmatprep.subr.bf16.mxu0 %v1149_v28  ;;  %v1215_v8 = vld [vmem:[#allocation2 + $0x1f4] ss:$8 sps:$4 sm:$0xff]   ;;  %v1210_v9 = vld [vmem:[#allocation2 + $0xf0] ss:$8 sps:$4 sm:$0xff]   ;;  %v1457_v12 = vshrl.u32 %v242_v11, 7  ;;  %s1058_s26 = sshll.u32 %s1384_s22, 8 }
  0x4c   : > { %v1213_v10 = vld [vmem:[#allocation2 + $0x1f0] ss:$8 sps:$4 sm:$0xff]   ;;  %s230_s6 = scalar_lea.vmem [#allocation5], %s975_s25  ;;  %s1474_s7 = scalar_lea.hbm %s1521_s5, %s1058_s26 }
  0x4d   : > { %v244_v13 = vsub.s32 0, %v1457_v12  ;;  %v252_v14 = vsub.s32 2, %v1457_v12  ;;  %v240_v15 = vld [vmem:[%s1518_s2] sm:$0xf]  ;;  %v248_v16 = vsub.s32 1, %v1457_v12  ;;  %v256_v17 = vsub.s32 3, %v1457_v12 }
  0x4e   : > { %808 = vmatpush1.bf16.msra.mxu1 %v1144_v29  ;;  %849 = vmatpush1.bf16.msra.mxu0 %v1147_v30  ;;  %s898_s8 = sshll.u32 %s230_s6, 4  ;;  %s884_s22 = scalar_lea.sflag [#allocation4], %s228_s16  ;;  %s1476_s8 = int_to_ptr.vmem [resolvable:$true] %s898_s8 }
  0x4f   : > { %809 = vmatprep.subr.bf16.mxu1 %v1152_v31  ;;  %850 = vmatprep.subr.bf16.mxu0 %v1155_v32  ;;  %v245_v18 = vrot.slane %v240_v15, %v244_v13  ;;  %v253_v19 = vrot.slane %v240_v15, %v252_v14  ;;  %v249_v20 = vrot.slane %v240_v15, %v248_v16  ;;  %s1260_s30 = scalar_lea.vmem %s1476_s8, 256  ;;  %p1532_p9 = scmp.ne.s32.totalorder %s1525_s28, 0 }
  0x50   : > { %v257_v21 = vrot.slane %v240_v15, %v256_v17  ;;  %p1261_p6 = scmp.ne.s32.totalorder %s1476_s8, %s1260_s30  ;;  %s1332_s11 = smov [#allocation5]  }
  0x51   : > { %s1264_s12 = sshll.u32 %s1332_s11, 4  ;;  %s1265_s12 = int_to_ptr.vmem [resolvable:$false] %s1264_s12 }
  0x52   : > { %810 = vmatpush1.bf16.msra.mxu1 %v1150_v33  ;;  %851 = vmatpush1.bf16.msra.mxu0 %v1153_v34  ;;  %p1262_p10 = pnand %p1261_p6, %p1532_p9  ;;  %s1266_s13 = scalar_lea.vmem %s1265_s12, 512 }
  0x53   : > { %811 = vmatprep.subr.bf16.mxu1 %v1158_v35  ;;  %852 = vmatprep.subr.bf16.mxu0 %v1161_v36  ;;  %p1267_p2 = scmp.lt.s32.totalorder %s1476_s8, %s1265_s12  ;;  %p1268_p3 = scmp.lt.s32.totalorder %s1266_s13, %s1260_s30 }
  0x54   : > { %p1263_p12 = pneg %p1262_p10 }
  0x55   : > { %p1269_p4 = por %p1268_p3, %p1267_p2 }
  0x56   : > { %812 = vmatpush1.bf16.msra.mxu1 %v1156_v37  ;;  %853 = vmatpush1.bf16.msra.mxu0 %v1159_v38 }
  0x57   : > { %813 = vmatprep.subr.bf16.mxu1 %v1164_v39  ;;  %854 = vmatprep.subr.bf16.mxu0 %v1167_v40  ;;  %p1270_p7 = pnand %p1269_p4, %p1263_p12 }
  0x5a   : > { %814 = vmatpush1.bf16.msra.mxu1 %v1162_v41  ;;  %855 = vmatpush1.bf16.msra.mxu0 %v1165_v42 }
  0x5b   : > { %815 = vmatprep.subr.bf16.mxu1 %v1170_v43  ;;  %856 = vmatprep.subr.bf16.mxu0 %v1173_v44 }
  0x5e   : > { %816 = vmatpush1.bf16.msra.mxu1 %v1168_v45  ;;  %857 = vmatpush1.bf16.msra.mxu0 %v1171_v46 }
  0x5f   : > { %817 = vmatprep.subr.bf16.mxu1 %v1176_v47  ;;  %858 = vmatprep.subr.bf16.mxu0 %v1179_v48 }
  0x62   : > { %818 = vmatpush1.bf16.msra.mxu1 %v1174_v49  ;;  %859 = vmatpush1.bf16.msra.mxu0 %v1177_v50 }
  0x63   : > { %819 = vmatprep.subr.bf16.mxu1 %v1182_v51  ;;  %860 = vmatprep.subr.bf16.mxu0 %v1185_v52 }
  0x66   : > { %820 = vmatpush1.bf16.msra.mxu1 %v1180_v53  ;;  %861 = vmatpush1.bf16.msra.mxu0 %v1183_v54 }
  0x67   : > { %821 = vmatprep.subr.bf16.mxu1 %v1188_v55  ;;  %862 = vmatprep.subr.bf16.mxu0 %v1191_v56 }
  0x6a   : > { %822 = vmatpush1.bf16.msra.mxu1 %v1186_v57  ;;  %863 = vmatpush1.bf16.msra.mxu0 %v1189_v58  ;;  %v467_v58 = vld [vmem:[%s1520_s4] sm:$0x3] }
  0x6b   : > { %823 = vmatprep.subr.bf16.mxu1 %v1194_v59  ;;  %864 = vmatprep.subr.bf16.mxu0 %v1197_v60  ;;  %v472_v59 = vrot.slane %v467_v58, %v244_v13  ;;  %v476_v60 = vrot.slane %v467_v58, %v248_v16 }
  0x6e   : > { %824 = vmatpush1.bf16.msra.mxu1 %v1192_v61  ;;  %865 = vmatpush1.bf16.msra.mxu0 %v1195_v62 }
  0x6f   : > { %825 = vmatprep.subr.bf16.mxu1 %v1200_v63  ;;  %866 = vmatprep.subr.bf16.mxu0 %v1203_v0 }
  0x72   : > { %826 = vmatpush1.bf16.msra.mxu1 %v1198_v1  ;;  %867 = vmatpush1.bf16.msra.mxu0 %v1201_v2 }
  0x73   : > { %827 = vmatprep.subr.bf16.mxu1 %v1206_v3  ;;  %868 = vmatprep.subr.bf16.mxu0 %v1209_v4 }
  0x76   : > { %828 = vmatpush1.bf16.msra.mxu1 %v1204_v5  ;;  %869 = vmatpush1.bf16.msra.mxu0 %v1207_v6 }
  0x77   : > { %829 = vmatprep.subr.bf16.mxu1 %v1212_v7  ;;  %870 = vmatprep.subr.bf16.mxu0 %v1215_v8 }
  0x7a   : > { %830 = vmatpush1.bf16.msra.mxu1 %v1210_v9  ;;  %871 = vmatpush1.bf16.msra.mxu0 %v1213_v10 }
 0x110   : > { %v323_v22 = vpop.f32.mrb[0].mxu0  ;;  %v364_v23 = vpop.f32.mrb[0].mxu1 }
 0x111   : > { %v324_v24 = vadd.f32 %v323_v22, %v245_v18  ;;  %v365_v25 = vadd.f32 %v364_v23, %v253_v19  ;;  %v325_v26 = vpop.f32.mrb[1].mxu0  ;;  %v366_v27 = vpop.f32.mrb[1].mxu1 }
 0x112   : > { %v326_v28 = vadd.f32 %v325_v26, %v249_v20  ;;  %v367_v29 = vadd.f32 %v366_v27, %v257_v21  ;;  %v327_v30 = vpop.f32.mrb[2].mxu0  ;;  %v368_v31 = vpop.f32.mrb[2].mxu1 }
 0x113   : > { %v985_v32 = vmul.f32 -1.442695, %v324_v24  ;;  %v987_v33 = vmul.f32 -1.442695, %v365_v25  ;;  %v328_v34 = vpop.f32.mrb[3].mxu0  ;;  %v369_v35 = vpop.f32.mrb[3].mxu1 }
 0x114   : > { %v986_v36 = vmul.f32 -1.442695, %v326_v28  ;;  %v988_v37 = vmul.f32 -1.442695, %v367_v29 }
 0x115   : > { %1216 = vpow2.f32 %v985_v32 }
 0x116   : > { %1218 = vpow2.f32 %v987_v33 }
 0x117   : > { %1220 = vpow2.f32 %v986_v36 }
 0x118   : > { %1222 = vpow2.f32 %v988_v37 }
 0x11f   : > { %v1217_v38 = vpop.eup %1216 }
 0x120   : > { %v1219_v39 = vpop.eup %1218  ;;  %v383_v40 = vadd.f32 1.0, %v1217_v38 }
 0x121   : > { %v1221_v41 = vpop.eup %1220  ;;  %v385_v42 = vadd.f32 1.0, %v1219_v39 }
 0x122   : > { %v1223_v43 = vpop.eup %1222  ;;  %1224 = vrcp.f32 %v383_v40  ;;  %v384_v44 = vadd.f32 1.0, %v1221_v41 }
 0x123   : > { %1226 = vrcp.f32 %v385_v42  ;;  %v386_v45 = vadd.f32 1.0, %v1223_v43 }
 0x124   : > { %1228 = vrcp.f32 %v384_v44 }
 0x125   : > { %1230 = vrcp.f32 %v386_v45 }
 0x12c   : > { %v1225_v46 = vpop.eup %1224 }
 0x12d   : > { %v1227_v47 = vpop.eup %1226  ;;  %v395_v49 = vmul.f32 %v1225_v46, %v324_v24 }
 0x12e   : > { %v1229_v48 = vpop.eup %1228  ;;  %v397_v51 = vmul.f32 %v1227_v47, %v365_v25 }
 0x12f   : > { %v1231_v50 = vpop.eup %1230  ;;  %v396_v52 = vmul.f32 %v1229_v48, %v326_v28  ;;  %v399_v55 = vpack.c.bf16 %v395_v49, %v395_v49 }
 0x130   : > { %v398_v53 = vmul.f32 %v1231_v50, %v367_v29  ;;  %v401_v57 = vpack.c.bf16 %v397_v51, %v397_v51 }
 0x131   : > { %v400_v54 = vpack.c.bf16 %v396_v52, %v396_v52 }
 0x132   : > { %v402_v56 = vpack.c.bf16 %v398_v53, %v398_v53 }
 0x133   : > { %831 = vmatprep.mubr.bf16.mxu1 %v400_v54 }
 0x134   : > { %872 = vmatprep.mubr.bf16.mxu0 %v402_v56  ;;  %832 = vmatmul.mubr.bf16.vlgmr.msra.gmra.mrb[4].mxu1 %v399_v55 }
 0x135   : > { %873 = vmatmul.mubr.bf16.vlgmr.msra.gmra.mrb[4].mxu0 %v401_v57 }
 0x207   : > { %v833_v61 = vpop.f32.mrb[4].mxu1 }
 0x208   : > { %v834_v62 = vadd.f32 %v833_v61, %v472_v59  ;;  %v874_v63 = vpop.f32.mrb[4].mxu0  ;;  %v835_v0 = vpop.f32.mrb[5].mxu1 }
 0x209   : > { %v836_v1 = vadd.f32 %v835_v0, %v476_v60  ;;  %v876_v2 = vpop.f32.mrb[5].mxu0  ;;  %v837_v3 = vpop.f32.mrb[6].mxu1 }
 0x20a   : > { %v875_v4 = vadd.f32 %v874_v63, %v834_v62  ;;  %v878_v5 = vpop.f32.mrb[6].mxu0  ;;  %v838_v6 = vpop.f32.mrb[7].mxu1 }
 0x20b   : > { %v877_v7 = vadd.f32 %v876_v2, %v836_v1  ;;  %v879_v8 = vpop.f32.mrb[7].mxu0 }
 0x20c   : > { %881 = vst [vmem:[%s230_s6] sm:$0xff] %v875_v4 }
 0x20d   : > { %882 = vst [vmem:[%s230_s6 + $0x8] sm:$0xff] %v877_v7 }
 0x20e   : > { %1273 = shalt.err (!%p1270_p7)
}
 0x20f   : > { %s1274_s14 = scalar_lea.hbm %s1474_s7, 256  ;;  %s1278_s17 = scalar_lea.hbm %s1521_s5, 512 }
 0x210   : > { %p1275_p8 = scmp.ne.s32.totalorder %s1474_s7, %s1274_s14  ;;  %p1279_p1 = scmp.lt.u32.totalorder %s1474_s7, %s1521_s5 }
 0x211   : > { %p1280_p0 = scmp.lt.u32.totalorder %s1278_s17, %s1274_s14  ;;  %p1282_p6 = scmp.lt.u32.totalorder %s1274_s14, %s1474_s7 }
 0x212   : > { %p1276_p11 = pnand %p1275_p8, %p1532_p9 }
 0x213   : > { %p1281_p5 = por %p1280_p0, %p1279_p1 }
 0x214   : > { %p1277_p13 = pneg %p1276_p11 }
 0x215   : > { %p1283_p10 = por %p1282_p6, %p1281_p5 }
 0x217   : > { %p1284_p12 = pnand %p1283_p10, %p1277_p13 }
 0x219   : > { %1287 = shalt.err (!%p1284_p12)
}
 0x21a   : > { %1067 = dma.vmem_to_hbm [thread:$0]  (%p1532_p9), %s1476_s8, 256, %s1474_s7, %s884_s22  }
 0x21b PF: > { %p1079_p2 = scmp.ge.s32.totalorder %s1326_s21, 2  ;;  %s910_s26 = sand.u32 1, %s1314_s18  }
 0x21c   : > { %p1533_p3 = scmp.ne.s32.totalorder %s1526_s29, 0  ;;  %s911_s6 = scalar_lea.sflag [#allocation4], %s910_s26 }
 0x21e   : > { %p1074_p4 = pnand %p1079_p2, %p1533_p3 }
 0x220   : > { %1309 = dma.done.wait (!%p1074_p4), %s911_s6, 256  }
 0x221   : > { %1311 = vsyncadd (!%p1074_p4), %s911_s6, 4294967040  ;;  %p16_p7 = scmp.ge.s32.totalorder %s1388_s24, 4   ;;  %s1534_s18 = smov %s1318_s19 }
 0x222   : > { %s1535_s19 = smov %s1322_s20  ;;  %s1536_s20 = smov %s1399_s27 }
 0x223   : > { %s1537_s21 = smov %s1388_s24  ;;  %18 = sbr.rel (!%p16_p7) target bundleno = 4 (0x4), region = 80 }
 0x22a   :  { %916 = vsyncpa [#allocation3], 1 }
 0x22b   :  { %918 = vsyncpa [#allocation3 + $0x1], 1 }
 0x22c   :  { %919 = vsyncpa [#allocation4], 1 }
 0x22d   :  { %921 = vsyncpa [#allocation4 + $0x1], 1 }

</bundles_post_ra>
